<compile_context>
chip_gen: v6e
topology: v6e:2x2x1
jax: 0.10.0
libtpu: 0.0.40
codegen_flags: <defaults>
</compile_context>

<pallas_src>
import functools

import jax
import jax.numpy as jnp
from jax import lax
from jax.experimental import pallas as pl
from jax.experimental.pallas import tpu as pltpu

LN_EPS = 1e-5  # nn.LayerNorm default eps


def _gelu_exact(x):
    # PyTorch nn.GELU() default (approximate='none') = exact erf formulation.
    return 0.5 * x * (1.0 + lax.erf(x * 0.7071067811865476))


def _round_up(x, m):
    return -(-x // m) * m


def _gated_gather_kernel(h_ref, w1e_ref, w2_ref, e_ref, wpe_ref, vec_ref,
                         o_ref, *, C, V):
    # Packed tiny vectors: rows are [b1 | gamma | beta | b2 | bp], lane-padded.
    vec = vec_ref[...]
    b1 = vec[0:1, :2 * C]
    gamma = vec[1:2, :2 * C]
    beta = vec[2:3, :2 * C]
    b2 = vec[3:4, :V]
    bp = vec[4:5, :C]

    hf = h_ref[...].astype(jnp.float32)                     # [TM, V*C] lane-dense

    # context-mean over views + Linear(C, 2C), fused:
    #   ctx @ W1 == h_flat @ W1_eff   with  W1_eff[v*C+c, :] = W1[c, :] / V
    hid = jnp.dot(hf, w1e_ref[...],
                  preferred_element_type=jnp.float32) + b1  # [TM, 2C]
    hid = _gelu_exact(hid)

    # LayerNorm(2C) (biased variance, like nn.LayerNorm)
    mu = jnp.mean(hid, axis=-1, keepdims=True)
    var = jnp.mean(jnp.square(hid - mu), axis=-1, keepdims=True)
    hid = (hid - mu) * lax.rsqrt(var + LN_EPS) * gamma + beta

    # Linear(2C, V) + softmax over views
    logits = jnp.dot(hid, w2_ref[...],
                     preferred_element_type=jnp.float32) + b2   # [TM, V]
    logits = logits - jnp.max(logits, axis=-1, keepdims=True)
    ez = jnp.exp(logits)
    weights = ez * pl.reciprocal(jnp.sum(ez, axis=-1, keepdims=True),
                                 approx=False)                  # [TM, V]

    # Gated gather + feature projection, fused:
    #   sum_v w_v * (h_v @ Wp + bp) == (expand(w) * h_flat) @ Wp_eff + bp
    #   expand: [TM, V] @ E -> [TM, V*C]  with  E[v, v*C+c] = 1
    #   Wp_eff[v*C+c, :] = Wp[c, :]        (softmax weights sum to 1 -> bias ok)
    wexp = jnp.dot(weights, e_ref[...],
                   preferred_element_type=jnp.float32)          # [TM, V*C]
    out = jnp.dot(wexp * hf, wpe_ref[...],
                  preferred_element_type=jnp.float32) + bp      # [TM, C]
    o_ref[...] = out.astype(o_ref.dtype)


def gated_gather(h, params, tm=1024):
    """h: [B, L, V, C] -> [B, L, C] (same dtype as h)."""
    B, L, V, C = h.shape
    N = B * L
    w1, b1, gamma, beta, w2, b2, wp, bp = params

    # Fold mean-over-views / per-view projection into the (tiny) weights once,
    # in the wrapper.  All weight-sized, negligible next to h traffic.
    w1_eff = jnp.tile(w1, (V, 1)) / jnp.float32(V)               # [V*C, 2C]
    wp_eff = jnp.tile(wp, (V, 1))                                # [V*C, C]
    expand = jnp.kron(jnp.eye(V, dtype=jnp.float32),
                      jnp.ones((1, C), jnp.float32))             # [V, V*C]

    # Pack the five tiny vectors into one lane-aligned (5, W) input.
    W = _round_up(max(2 * C, V), 128)

    def _pad(v):
        v = v.reshape(1, -1).astype(jnp.float32)
        return jnp.pad(v, ((0, 0), (0, W - v.shape[1])))

    vecs = jnp.concatenate(
        [_pad(b1), _pad(gamma), _pad(beta), _pad(b2), _pad(bp)], axis=0)

    # Lane-dense, row-major view of h (free reshape). No padding pass.
    h2 = h.reshape(N, V * C)

    # Row tile: big enough for the HBM roofline plateau, small enough that the
    # grid has >=4 steps (v7x megacore sharding + pipeline double-buffering).
    # Ragged last block is fine: rows are independent, OOB output rows are
    # never written back.  (Do NOT add cross-row reductions to the kernel.)
    sub = 16 if h.dtype == jnp.bfloat16 else 8   # min sublane granularity
    if N <= sub:
        tm = N                                   # single full-extent block
    else:
        tm = min(tm, _round_up(pl.cdiv(N, 4), sub))
        tm = max(sub, _round_up(tm, sub))
    grid = (pl.cdiv(N, tm),)

    full = lambda i: (0, 0)
    kernel = functools.partial(_gated_gather_kernel, C=C, V=V)
    out = pl.pallas_call(
        kernel,
        out_shape=jax.ShapeDtypeStruct((N, C), h.dtype),
        grid_spec=pltpu.PrefetchScalarGridSpec(
            num_scalar_prefetch=0,
            grid=grid,
            in_specs=[
                pl.BlockSpec((tm, V * C), lambda i: (i, 0)),   # h rows (lane dense)
                pl.BlockSpec((V * C, 2 * C), full),            # fused gate W1
                pl.BlockSpec((2 * C, V), full),                # gate W2
                pl.BlockSpec((V, V * C), full),                # weight expander E
                pl.BlockSpec((V * C, C), full),                # fused proj W
                pl.BlockSpec((5, W), full),                    # packed b1/g/b/b2/bp
            ],
            out_specs=pl.BlockSpec((tm, C), lambda i: (i, 0)),
        ),
        compiler_params=pltpu.CompilerParams(
            dimension_semantics=("parallel",)),
    )(h2, w1_eff, w2, expand, wp_eff, vecs)
    return out.reshape(B, L, C)


def init_params(key, C, V):
    k = jax.random.split(key, 5)
    s = 0.02
    w1 = jax.random.normal(k[0], (C, 2 * C), jnp.float32) * s
    b1 = jax.random.normal(k[1], (1, 2 * C), jnp.float32) * s
    gamma = jnp.ones((1, 2 * C), jnp.float32)
    beta = jnp.zeros((1, 2 * C), jnp.float32)
    w2 = jax.random.normal(k[2], (2 * C, V), jnp.float32) * s
    b2 = jnp.zeros((1, V), jnp.float32)
    wp = jax.random.normal(k[3], (C, C), jnp.float32) * s
    bp = jax.random.normal(k[4], (1, C), jnp.float32) * s
    return (w1, b1, gamma, beta, w2, b2, wp, bp)


def gated_gather_ref(h, params):
    """Pure-JAX reference mirroring the PyTorch forward (per-view proj + einsum)."""
    w1, b1, gamma, beta, w2, b2, wp, bp = params
    ctx = h.mean(axis=2)
    hid = ctx @ w1 + b1
    hid = _gelu_exact(hid)
    mu = hid.mean(-1, keepdims=True)
    var = ((hid - mu) ** 2).mean(-1, keepdims=True)
    hid = (hid - mu) / jnp.sqrt(var + LN_EPS) * gamma + beta
    weights = jax.nn.softmax(hid @ w2 + b2, axis=-1)      # [B, L, V]
    proj = h @ wp + bp                                    # [B, L, V, C]
    return jnp.einsum('blv,blvc->blc', weights, proj)


if __name__ == "__main__":
    V, C = 4, 32
    key = jax.random.PRNGKey(0)
    kh, kp, kh2 = jax.random.split(key, 3)
    params = init_params(kp, C, V)

    # Case 1: evenly-divisible rows (N = 16, tm = 8, grid = 2).
    B, L = 2, 8
    h = jax.random.normal(kh, (B, L, V, C), jnp.float32)
    out = jax.block_until_ready(gated_gather(h, params))
    ref = gated_gather_ref(h, params)
    assert out.shape == (B, L, C)
    assert jnp.allclose(out, ref, atol=1e-5, rtol=1e-5), "mismatch vs reference"

    # Case 2: ragged last block (N = 21, tm = 8, grid = 3) — exercises the
    # no-pad path: garbage rows in the partial block are never written back.
    B2, L2 = 3, 7
    h2 = jax.random.normal(kh2, (B2, L2, V, C), jnp.float32)
    out2 = jax.block_until_ready(gated_gather(h2, params))
    ref2 = gated_gather_ref(h2, params)
    assert out2.shape == (B2, L2, C)
    assert jnp.allclose(out2, ref2, atol=1e-5, rtol=1e-5), "mismatch (ragged)"

    print("KERNEL_OK")
</pallas_src>

<mosaic_0001>
module attributes {stable_mosaic.version = 11 : i64} {
  func.func @_gated_gather_kernel(%arg0: i32, %arg1: memref<8x128xf32, #tpu.memory_space<vmem>>, %arg2: memref<128x64xf32, #tpu.memory_space<vmem>>, %arg3: memref<64x4xf32, #tpu.memory_space<vmem>>, %arg4: memref<4x128xf32, #tpu.memory_space<vmem>>, %arg5: memref<128x32xf32, #tpu.memory_space<vmem>>, %arg6: memref<5x128xf32, #tpu.memory_space<vmem>>, %arg7: memref<8x32xf32, #tpu.memory_space<vmem>>) attributes {dimension_semantics = [#tpu.dimension_semantics<parallel>], iteration_bounds = array<i64: 2>, scalar_prefetch = 0 : i64, scratch_operands = 0 : i64, tpu.core_type = #tpu.core_type<tc>, window_params = [{transform_indices = @transform_0, window_bounds = array<i64: 8, 128>}, {pipeline_mode = #tpu.pipeline_mode<synchronous>, transform_indices = @transform_1, window_bounds = array<i64: 128, 64>}, {pipeline_mode = #tpu.pipeline_mode<synchronous>, transform_indices = @transform_2, window_bounds = array<i64: 64, 4>}, {pipeline_mode = #tpu.pipeline_mode<synchronous>, transform_indices = @transform_3, window_bounds = array<i64: 4, 128>}, {pipeline_mode = #tpu.pipeline_mode<synchronous>, transform_indices = @transform_4, window_bounds = array<i64: 128, 32>}, {pipeline_mode = #tpu.pipeline_mode<synchronous>, transform_indices = @transform_5, window_bounds = array<i64: 5, 128>}, {transform_indices = @transform_6, window_bounds = array<i64: 8, 32>}]} {
    %c0 = arith.constant 0 : index
    %c0_0 = arith.constant 0 : index
    %0 = vector.load %arg6[%c0, %c0_0] : memref<5x128xf32, #tpu.memory_space<vmem>>, vector<5x128xf32>
    %1 = vector.extract_strided_slice %0 {offsets = [0, 0], sizes = [1, 64], strides = [1, 1]} : vector<5x128xf32> to vector<1x64xf32>
    %2 = vector.extract_strided_slice %0 {offsets = [1, 0], sizes = [1, 64], strides = [1, 1]} : vector<5x128xf32> to vector<1x64xf32>
    %3 = vector.extract_strided_slice %0 {offsets = [2, 0], sizes = [1, 64], strides = [1, 1]} : vector<5x128xf32> to vector<1x64xf32>
    %4 = vector.extract_strided_slice %0 {offsets = [3, 0], sizes = [1, 4], strides = [1, 1]} : vector<5x128xf32> to vector<1x4xf32>
    %5 = vector.extract_strided_slice %0 {offsets = [4, 0], sizes = [1, 32], strides = [1, 1]} : vector<5x128xf32> to vector<1x32xf32>
    %c0_1 = arith.constant 0 : index
    %c0_2 = arith.constant 0 : index
    %6 = vector.load %arg1[%c0_1, %c0_2] : memref<8x128xf32, #tpu.memory_space<vmem>>, vector<8x128xf32>
    %c0_3 = arith.constant 0 : index
    %c0_4 = arith.constant 0 : index
    %7 = vector.load %arg2[%c0_3, %c0_4] : memref<128x64xf32, #tpu.memory_space<vmem>>, vector<128x64xf32>
    %cst = arith.constant dense<0.000000e+00> : vector<8x64xf32>
    %8 = tpu.matmul %6, %7, %cst {dimension_numbers = #tpu.dot_dimension_numbers<[1], [0], [0], [1], [0, 0, 1, 1], [], []>} : vector<8x128xf32>, vector<128x64xf32>, vector<8x64xf32> -> vector<8x64xf32>
    %9 = vector.broadcast %1 : vector<1x64xf32> to vector<8x64xf32>
    %10 = arith.addf %8, %9 : vector<8x64xf32>
    %cst_5 = arith.constant 5.000000e-01 : f32
    %11 = vector.broadcast %cst_5 : f32 to vector<8x64xf32>
    %12 = arith.mulf %11, %10 : vector<8x64xf32>
    %cst_6 = arith.constant 0.707106769 : f32
    %13 = vector.broadcast %cst_6 : f32 to vector<8x64xf32>
    %14 = arith.mulf %10, %13 : vector<8x64xf32>
    %15 = math.erf %14 : vector<8x64xf32>
    %cst_7 = arith.constant 1.000000e+00 : f32
    %16 = vector.broadcast %cst_7 : f32 to vector<8x64xf32>
    %17 = arith.addf %16, %15 : vector<8x64xf32>
    %18 = arith.mulf %12, %17 : vector<8x64xf32>
    %cst_8 = arith.constant dense<0.000000e+00> : vector<8xf32>
    %19 = vector.multi_reduction <add>, %18, %cst_8 [1] : vector<8x64xf32> to vector<8xf32>
    %20 = vector.shape_cast %19 : vector<8xf32> to vector<8x1xf32>
    %cst_9 = arith.constant 6.400000e+01 : f32
    %21 = vector.broadcast %cst_9 : f32 to vector<8x1xf32>
    %22 = arith.divf %20, %21 : vector<8x1xf32>
    %23 = vector.broadcast %22 : vector<8x1xf32> to vector<8x64xf32>
    %24 = arith.subf %18, %23 : vector<8x64xf32>
    %25 = arith.mulf %24, %24 : vector<8x64xf32>
    %cst_10 = arith.constant dense<0.000000e+00> : vector<8xf32>
    %26 = vector.multi_reduction <add>, %25, %cst_10 [1] : vector<8x64xf32> to vector<8xf32>
    %27 = vector.shape_cast %26 : vector<8xf32> to vector<8x1xf32>
    %cst_11 = arith.constant 6.400000e+01 : f32
    %28 = vector.broadcast %cst_11 : f32 to vector<8x1xf32>
    %29 = arith.divf %27, %28 : vector<8x1xf32>
    %30 = vector.broadcast %22 : vector<8x1xf32> to vector<8x64xf32>
    %31 = arith.subf %18, %30 : vector<8x64xf32>
    %cst_12 = arith.constant 9.99999974E-6 : f32
    %32 = vector.broadcast %cst_12 : f32 to vector<8x1xf32>
    %33 = arith.addf %29, %32 : vector<8x1xf32>
    %34 = math.rsqrt %33 : vector<8x1xf32>
    %35 = vector.broadcast %34 : vector<8x1xf32> to vector<8x64xf32>
    %36 = arith.mulf %31, %35 : vector<8x64xf32>
    %37 = vector.broadcast %2 : vector<1x64xf32> to vector<8x64xf32>
    %38 = arith.mulf %36, %37 : vector<8x64xf32>
    %39 = vector.broadcast %3 : vector<1x64xf32> to vector<8x64xf32>
    %40 = arith.addf %38, %39 : vector<8x64xf32>
    %c0_13 = arith.constant 0 : index
    %c0_14 = arith.constant 0 : index
    %41 = vector.load %arg3[%c0_13, %c0_14] : memref<64x4xf32, #tpu.memory_space<vmem>>, vector<64x4xf32>
    %cst_15 = arith.constant dense<0.000000e+00> : vector<8x4xf32>
    %42 = tpu.matmul %40, %41, %cst_15 {dimension_numbers = #tpu.dot_dimension_numbers<[1], [0], [0], [1], [0, 0, 1, 1], [], []>} : vector<8x64xf32>, vector<64x4xf32>, vector<8x4xf32> -> vector<8x4xf32>
    %43 = vector.broadcast %4 : vector<1x4xf32> to vector<8x4xf32>
    %44 = arith.addf %42, %43 : vector<8x4xf32>
    %cst_16 = arith.constant dense<0xFF800000> : vector<8xf32>
    %45 = vector.multi_reduction <maximumf>, %44, %cst_16 [1] : vector<8x4xf32> to vector<8xf32>
    %46 = vector.shape_cast %45 : vector<8xf32> to vector<8x1xf32>
    %47 = vector.broadcast %46 : vector<8x1xf32> to vector<8x4xf32>
    %48 = arith.subf %44, %47 : vector<8x4xf32>
    %49 = math.exp %48 : vector<8x4xf32>
    %cst_17 = arith.constant dense<0.000000e+00> : vector<8xf32>
    %50 = vector.multi_reduction <add>, %49, %cst_17 [1] : vector<8x4xf32> to vector<8xf32>
    %51 = vector.shape_cast %50 : vector<8xf32> to vector<8x1xf32>
    %52 = tpu.reciprocal %51 : vector<8x1xf32> -> vector<8x1xf32>
    %53 = vector.broadcast %52 : vector<8x1xf32> to vector<8x4xf32>
    %54 = arith.mulf %49, %53 : vector<8x4xf32>
    %c0_18 = arith.constant 0 : index
    %c0_19 = arith.constant 0 : index
    %55 = vector.load %arg4[%c0_18, %c0_19] : memref<4x128xf32, #tpu.memory_space<vmem>>, vector<4x128xf32>
    %cst_20 = arith.constant dense<0.000000e+00> : vector<8x128xf32>
    %56 = tpu.matmul %54, %55, %cst_20 {dimension_numbers = #tpu.dot_dimension_numbers<[1], [0], [0], [1], [0, 0, 1, 1], [], []>} : vector<8x4xf32>, vector<4x128xf32>, vector<8x128xf32> -> vector<8x128xf32>
    %57 = arith.mulf %56, %6 : vector<8x128xf32>
    %c0_21 = arith.constant 0 : index
    %c0_22 = arith.constant 0 : index
    %58 = vector.load %arg5[%c0_21, %c0_22] : memref<128x32xf32, #tpu.memory_space<vmem>>, vector<128x32xf32>
    %cst_23 = arith.constant dense<0.000000e+00> : vector<8x32xf32>
    %59 = tpu.matmul %57, %58, %cst_23 {dimension_numbers = #tpu.dot_dimension_numbers<[1], [0], [0], [1], [0, 0, 1, 1], [], []>} : vector<8x128xf32>, vector<128x32xf32>, vector<8x32xf32> -> vector<8x32xf32>
    %60 = vector.broadcast %5 : vector<1x32xf32> to vector<8x32xf32>
    %61 = arith.addf %59, %60 : vector<8x32xf32>
    %c0_24 = arith.constant 0 : index
    %c0_25 = arith.constant 0 : index
    %62 = vector.load %arg7[%c0_24, %c0_25] : memref<8x32xf32, #tpu.memory_space<vmem>>, vector<8x32xf32>
    tpu.vector_store %arg7[%c0_24, %c0_25], %61 {strides = array<i32>} : memref<8x32xf32, #tpu.memory_space<vmem>>, vector<8x32xf32>,
    return
  }
  func.func @transform_0(%arg0: i32) -> (i32, i32) {
    %c0_i32 = arith.constant 0 : i32
    %c0_i32_0 = arith.constant 0 : i32
    return %arg0, %c0_i32 : i32, i32
  }
  func.func @transform_1(%arg0: i32) -> (i32, i32) {
    %c0_i32 = arith.constant 0 : i32
    %c0_i32_0 = arith.constant 0 : i32
    %c0_i32_1 = arith.constant 0 : i32
    return %c0_i32, %c0_i32_0 : i32, i32
  }
  func.func @transform_2(%arg0: i32) -> (i32, i32) {
    %c0_i32 = arith.constant 0 : i32
    %c0_i32_0 = arith.constant 0 : i32
    %c0_i32_1 = arith.constant 0 : i32
    return %c0_i32, %c0_i32_0 : i32, i32
  }
  func.func @transform_3(%arg0: i32) -> (i32, i32) {
    %c0_i32 = arith.constant 0 : i32
    %c0_i32_0 = arith.constant 0 : i32
    %c0_i32_1 = arith.constant 0 : i32
    return %c0_i32, %c0_i32_0 : i32, i32
  }
  func.func @transform_4(%arg0: i32) -> (i32, i32) {
    %c0_i32 = arith.constant 0 : i32
    %c0_i32_0 = arith.constant 0 : i32
    %c0_i32_1 = arith.constant 0 : i32
    return %c0_i32, %c0_i32_0 : i32, i32
  }
  func.func @transform_5(%arg0: i32) -> (i32, i32) {
    %c0_i32 = arith.constant 0 : i32
    %c0_i32_0 = arith.constant 0 : i32
    %c0_i32_1 = arith.constant 0 : i32
    return %c0_i32, %c0_i32_0 : i32, i32
  }
  func.func @transform_6(%arg0: i32) -> (i32, i32) {
    %c0_i32 = arith.constant 0 : i32
    %c0_i32_0 = arith.constant 0 : i32
    return %arg0, %c0_i32 : i32, i32
  }
}

</mosaic_0001>

<bundles_post_ra>
// kernel: tpu_custom_call.1
= control target key start
LH: loop header
LB: loop body
LE: loop exit
PB: predicated region body
PF: predicated region fallthrough
CT: control target
= control target key end

     0   :  { %11 = vsyncpa [#allocation3], 0  ;;  %s1303_s0 = inlined_call_operand.vmem [shape: f32[16,128], index: 0, kind: input, shape index: {}]   ;;  %s1304_s1 = inlined_call_operand.vmem [shape: f32[128,64], index: 1, kind: input, shape index: {}]   ;;  %s1305_s2 = inlined_call_operand.vmem [shape: f32[64,4], index: 2, kind: input, shape index: {}]   ;;  %s1306_s3 = inlined_call_operand.vmem [shape: f32[4,128], index: 3, kind: input, shape index: {}]   ;;  %s1307_s4 = inlined_call_operand.vmem [shape: f32[128,32], index: 4, kind: input, shape index: {}]   ;;  %s1308_s5 = inlined_call_operand.vmem [shape: f32[5,128], index: 5, kind: input, shape index: {}]   ;;  %s1309_s6 = inlined_call_operand.hbm [shape: f32[16,32], index: 6, kind: output, shape index: {}]  }
   0x1   :  { %13 = vsyncpa [#allocation3 + $0x1], 0  ;;  %s1011_s21 = smov 0   ;;  %s1013_s22 = smov 0  }
   0x2   :  { %s1015_s23 = smov 0   ;;  %s1017_s24 = smov 0  }
   0x3 LB: > { %s1032_s25 = sadd.s32 4294967295, %s971_s24   ;;  %s710_s26 = sadd.s32 4294967294, %s971_s24   ;;  %s971_s24 = sphi %s1017_s24, %s1315_s24   ;;  %s967_s23 = sphi %s1015_s23, %s1314_s23   ;;  %s963_s22 = sphi %s1013_s22, %s1313_s22   ;;  %s959_s21 = sphi %s1011_s21, %s1312_s21  }
   0x4   : > { %s1036_s27 = sadd.s32 1, %s971_s24   ;;  %s157_s28 = sadd.s32 1, %s967_s23 }
   0x5   : > { %s154_s29 = ssub.s32 %s971_s24, %s1036_s27  ;;  %p167_p0 = scmp.ne.s32.totalorder %s967_s23, %s963_s22 }
   0x6   : > { %p155_p1 = scmp.eq.s32.totalorder %s154_s29, 0  ;;  %p168_p2 = scmp.eq.s32.totalorder %s1032_s25, 1 }
   0x7   : > { %p173_p3 = scmp.ne.s32.totalorder %s963_s22, %s959_s21  ;;  %p174_p4 = scmp.eq.s32.totalorder %s710_s26, 1 }
   0x8   : > { %s1047_s30 = scalar_select %p155_p1, %s967_s23, %s157_s28  }
   0x9   : > { %p1049_p5 = por %p168_p2, %p167_p0  ;;  %p1053_p6 = por %p174_p4, %p173_p3 }
   0xa   : > { %p713_p7 = scmp.ge.s32.totalorder %s971_s24, 1  ;;  %p214_p8 = scmp.lt.s32.totalorder %s971_s24, 3 }
   0xc   : > { %p215_p9 = pnand %p713_p7, %p214_p8 }
   0xd   : > { %p243_p10 = scmp.lt.s32.totalorder (!%p215_p9), %s1032_s25, 1  ;;  %s240_s29 = sand.u32 (!%p215_p9), 1, %s963_s22  }
   0xe   : > { %218 = sbr.rel (%p215_p9) target bundleno = 1485 (0x5cd), region = 44  ;;  %s714_s9 = sshll.u32 (!%p215_p9), %s240_s29, 3 }
   0xf   : > { %s720_s10 = sshll.u32 (!%p215_p9), %s1032_s25, 7  ;;  %s242_s11 = scalar_lea.vmem (!%p215_p9), [#allocation2], %s714_s9 }
  0x10   : > { %s651_s12 = sshll.u32 (!%p215_p9), %s242_s11, 4  ;;  %s1268_s15 = scalar_lea.hbm (!%p215_p9), %s1309_s6, %s720_s10  ;;  %s652_s12 = int_to_ptr.vmem [resolvable:$true] %s651_s12 }
  0x11   : > { %s911_s17 = scalar_lea.vmem (!%p215_p9), %s652_s12, 128 }
  0x12   : > { %p912_p11 = scmp.ne.s32.totalorder (!%p215_p9), %s652_s12, %s911_s17 }
  0x13   : > { %v264_v0 = vld [vmem:[%s1304_s1 + $0x78] sm:$0xff]  ;;  %v973_v1 = vmov 0.0   ;;  %v263_v2 = vld [vmem:[%s1304_s1 + $0x70] sm:$0xff]  ;;  %vm974_vm0 = vmmov 0   ;;  %v262_v3 = vld [vmem:[%s1304_s1 + $0x68] sm:$0xff]  ;;  %s244_s16 = scalar_select %p243_p10, %s1032_s25, 1  ;;  %v265_v18 = vlaneseq }
  0x14   : > { %768 = vmatprep.subr.mxu0 %v973_v1  ;;  %800 = vmatprep.mubr.msk.f32.mxu0 %vm974_vm0, %v973_v1  ;;  %v261_v4 = vld [vmem:[%s1304_s1 + $0x60] sm:$0xff]  ;;  %v260_v5 = vld [vmem:[%s1304_s1 + $0x58] sm:$0xff]  ;;  %v259_v6 = vld [vmem:[%s1304_s1 + $0x50] sm:$0xff]  ;;  %vm344_vm1 = vcmask 523264   ;;  %vm454_vm2 = vcmask 31744   ;;  %vm470_vm3 = vcmask 1043456   ;;  %p913_p12 = pnand %p912_p11, %p1049_p5 }
  0x15   : > { %769 = vmatpush3.msra.mxu0 %v264_v0  ;;  %822 = vmatprep.subr.mxu1 %v973_v1  ;;  %v258_v7 = vld [vmem:[%s1304_s1 + $0x48] sm:$0xff]  ;;  %v257_v8 = vld [vmem:[%s1304_s1 + $0x40] sm:$0xff]  ;;  %v256_v9 = vld [vmem:[%s1304_s1 + $0x38] sm:$0xff]  ;;  %s715_s26 = sshll.u32 %s244_s16, 3  ;;  %v1139_v19 = vshrl.u32 %v265_v18, 7  ;;  %vm635_vm4 = vcmask 261120  }
  0x16   : > { %770 = vmatprep.subr.mxu0 %v973_v1  ;;  %824 = vmatprep.mubr.msk.f32.mxu1 %vm974_vm0, %v973_v1  ;;  %v255_v10 = vld [vmem:[%s1304_s1 + $0x30] sm:$0xff]  ;;  %v254_v11 = vld [vmem:[%s1304_s1 + $0x28] sm:$0xff]  ;;  %v253_v12 = vld [vmem:[%s1304_s1 + $0x20] sm:$0xff]  ;;  %s246_s13 = scalar_lea.vmem %s1303_s0, %s715_s26  ;;  %s638_s16 = scalar_lea.sflag [#allocation3], %s240_s29 }
  0x17   : > { %771 = vmatpush3.msra.mxu0 %v263_v2  ;;  %v252_v13 = vld [vmem:[%s1304_s1 + $0x18] sm:$0xff]  ;;  %v251_v14 = vld [vmem:[%s1304_s1 + $0x10] sm:$0xff]  ;;  %v250_v15 = vld [vmem:[%s1304_s1 + $0x8] sm:$0xff]  ;;  %v267_v20 = vsub.s32 0, %v1139_v19  ;;  %v361_v48 = vsub.s32 1, %v1139_v19  ;;  %v366_v49 = vsub.s32 2, %v1139_v19  ;;  %p914_p13 = pneg %p913_p12 }
  0x18   : > { %772 = vmatprep.subr.mxu0 %v973_v1  ;;  %v249_v16 = vld [vmem:[%s1304_s1] sm:$0xff]  ;;  %v376_v37 = vld [vmem:[%s1305_s2 + $0x38] sm:$0xff]  ;;  %v375_v38 = vld [vmem:[%s1305_s2 + $0x30] sm:$0xff]  ;;  %v379_v56 = vsub.s32 3, %v1139_v19  ;;  %s975_s25 = smov [#allocation2]  }
  0x19   : > { %773 = vmatpush3.msra.mxu0 %v262_v3  ;;  %v1132_v17 = vld [vmem:[%s246_s13] sm:$0xff]  ;;  %v374_v39 = vld [vmem:[%s1305_s2 + $0x28] sm:$0xff]  ;;  %v372_v41 = vld [vmem:[%s1305_s2 + $0x18] sm:$0xff]  ;;  %s915_s18 = sshll.u32 %s975_s25, 4  ;;  %s916_s18 = int_to_ptr.vmem [resolvable:$false] %s915_s18 }
  0x1a   : > { %774 = vmatprep.subr.mxu0 %v973_v1  ;;  %v1145_v21 = vld [vmem:[%s1308_s5] sm:$0x1f]  ;;  %v371_v42 = vld [vmem:[%s1305_s2 + $0x10] sm:$0xff]  ;;  %v370_v43 = vld [vmem:[%s1305_s2 + $0x8] sm:$0xff]  ;;  %s917_s19 = scalar_lea.vmem %s916_s18, 256  ;;  %p918_p0 = scmp.lt.s32.totalorder %s652_s12, %s916_s18 }
  0x1b   : > { %775 = vmatpush3.msra.mxu0 %v261_v4  ;;  %v268_v22 = vrot.slane %v1145_v21, %v267_v20  ;;  %v373_v40 = vld [vmem:[%s1305_s2 + $0x20] sm:$0xff]  ;;  %v362_v50 = vrot.slane %v1145_v21, %v361_v48  ;;  %v367_v53 = vrot.slane %v1145_v21, %v366_v49  ;;  %v380_v57 = vrot.slane %v1145_v21, %v379_v56  ;;  %v551_v18 = vld [vmem:[%s1307_s4 + $0x30] sm:$0xff]  ;;  %v550_v20 = vld [vmem:[%s1307_s4 + $0x28] sm:$0xff]  ;;  %p919_p1 = scmp.lt.s32.totalorder %s917_s19, %s911_s17 }
  0x1c   : > { %776 = vmatprep.subr.mxu0 %v973_v1  ;;  %v369_v44 = vld [vmem:[%s1305_s2] sm:$0xff] }
  0x1d   : > { %777 = vmatpush3.msra.mxu0 %v260_v5  ;;  %v466_v4 = vld [vmem:[%s1306_s3] sm:$0xf]  ;;  %p920_p2 = por %p919_p1, %p918_p0 }
  0x1e   : > { %778 = vmatprep.subr.mxu0 %v973_v1  ;;  %823 = vmatpush3.msk.msra.mxu1 %vm470_vm3, %v466_v4 }
  0x1f   : > { %779 = vmatpush3.msra.mxu0 %v259_v6  ;;  %827 = vmatprep.subr.mxu1 %v973_v1  ;;  %p921_p3 = pnand %p920_p2, %p914_p13 }
  0x20   : > { %780 = vmatprep.subr.mxu0 %v973_v1 }
  0x21   : > { %781 = vmatpush3.msra.mxu0 %v258_v7 }
  0x22   : > { %782 = vmatprep.subr.mxu0 %v973_v1 }
  0x23   : > { %783 = vmatpush3.msra.mxu0 %v257_v8  ;;  %v560_v8 = vld [vmem:[%s1307_s4 + $0x78] sm:$0xff] }
  0x24   : > { %784 = vmatprep.subr.mxu0 %v973_v1 }
  0x25   : > { %785 = vmatpush3.msra.mxu0 %v256_v9  ;;  %v559_v9 = vld [vmem:[%s1307_s4 + $0x70] sm:$0xff] }
  0x26   : > { %786 = vmatprep.subr.mxu0 %v973_v1 }
  0x27   : > { %787 = vmatpush3.msra.mxu0 %v255_v10  ;;  %v558_v10 = vld [vmem:[%s1307_s4 + $0x68] sm:$0xff] }
  0x28   : > { %788 = vmatprep.subr.mxu0 %v973_v1 }
  0x29   : > { %789 = vmatpush3.msra.mxu0 %v254_v11  ;;  %v557_v11 = vld [vmem:[%s1307_s4 + $0x60] sm:$0xff] }
  0x2a   : > { %790 = vmatprep.subr.mxu0 %v973_v1 }
  0x2b   : > { %791 = vmatpush3.msra.mxu0 %v253_v12  ;;  %v556_v12 = vld [vmem:[%s1307_s4 + $0x58] sm:$0xff] }
  0x2c   : > { %792 = vmatprep.subr.mxu0 %v973_v1 }
  0x2d   : > { %793 = vmatpush3.msra.mxu0 %v252_v13  ;;  %v555_v13 = vld [vmem:[%s1307_s4 + $0x50] sm:$0xff] }
  0x2e   : > { %794 = vmatprep.subr.mxu0 %v973_v1 }
  0x2f   : > { %795 = vmatpush3.msra.mxu0 %v251_v14  ;;  %v554_v14 = vld [vmem:[%s1307_s4 + $0x48] sm:$0xff] }
  0x30   : > { %796 = vmatprep.subr.mxu0 %v973_v1 }
  0x31   : > { %797 = vmatpush3.msra.mxu0 %v250_v15  ;;  %v553_v15 = vld [vmem:[%s1307_s4 + $0x40] sm:$0xff] }
  0x32   : > { %798 = vmatprep.subr.mxu0 %v973_v1 }
  0x33   : > { %799 = vmatpush3.msra.mxu0 %v249_v16  ;;  %v552_v16 = vld [vmem:[%s1307_s4 + $0x38] sm:$0xff] }
  0x34   : > { %801 = vmatmul.mubr.f32.vlgmr.msra.gmra.mxu0 %v1132_v17  ;;  %803 = vmatprep.subr.mxu0 %v973_v1 }
  0x35   : > { %819 = vmatprep.mubr.msk.f32.mxu0 %vm974_vm0, %v973_v1  ;;  %804 = vmatpush3.msra.mxu0 %v376_v37 }
  0x36   : > { %805 = vmatprep.subr.mxu0 %v973_v1 }
  0x37   : > { %806 = vmatpush3.msra.mxu0 %v375_v38 }
  0x38   : > { %807 = vmatprep.subr.mxu0 %v973_v1 }
  0x39   : > { %808 = vmatpush3.msra.mxu0 %v374_v39 }
  0x3a   : > { %809 = vmatprep.subr.mxu0 %v973_v1 }
  0x3b   : > { %810 = vmatpush3.msra.mxu0 %v373_v40 }
  0x3c   : > { %811 = vmatprep.subr.mxu0 %v973_v1 }
  0x3d   : > { %812 = vmatpush3.msra.mxu0 %v372_v41 }
  0x3e   : > { %813 = vmatprep.subr.mxu0 %v973_v1 }
  0x3f   : > { %814 = vmatpush3.msra.mxu0 %v371_v42 }
  0x40   : > { %815 = vmatprep.subr.mxu0 %v973_v1 }
  0x41   : > { %816 = vmatpush3.msra.mxu0 %v370_v43 }
  0x42   : > { %817 = vmatprep.subr.mxu0 %v973_v1 }
  0x43   : > { %818 = vmatpush3.msra.mxu0 %v369_v44 }
  0xf4   : > { %v335_v23 = vpop.f32.mrf.mxu0 }
  0xf5   : > { %v336_v24 = vadd.f32 %v335_v23, %v268_v22  ;;  %v549_v22 = vld [vmem:[%s1307_s4 + $0x20] sm:$0xff]  ;;  %v548_v23 = vld [vmem:[%s1307_s4 + $0x18] sm:$0xff] }
  0xf6   : > { %v802_v25 = vpop.f32.mrf.mxu0 }
  0xf7   : > { %v340_v26 = vmul.f32 0.70710677, %v336_v24  ;;  %v339_v28 = vmul.f32 0.5, %v336_v24  ;;  %v547_v24 = vld [vmem:[%s1307_s4 + $0x10] sm:$0xff]  ;;  %v546_v25 = vld [vmem:[%s1307_s4 + $0x8] sm:$0xff] }
  0xf9   : > { %903 = verf.f32 %v340_v26  ;;  %v545_v26 = vld [vmem:[%s1307_s4] sm:$0xff] }
 0x106   : > { %v904_v27 = vpop.eup %903 }
 0x107   : > { %v342_v29 = vadd.f32 1.0, %v904_v27 }
 0x109   : > { %v343_v30 = vmul.f32 %v342_v29, %v339_v28 }
 0x10b   : > { %v345_v31 = vsel %vm344_vm1, %v343_v30, 0.0 }
 0x10c   : > { %346 = vadd.xlane.f32.xlu0 %v345_v31 }
 0x195   : > { %v347_v32 = vpop.xlane.xlu0 %346 }
 0x196   : > { %v349_v33 = vmul.f32 0.015625, %v347_v32 }
 0x198   : > { %v350_v34 = vsub.f32 %v343_v30, %v349_v33  ;;  %v563_v30 = vsub.s32 4, %v1139_v19 }
 0x19a   : > { %v351_v35 = vmul.f32 %v350_v34, %v350_v34  ;;  %v564_v31 = vrot.slane %v1145_v21, %v563_v30 }
 0x19c   : > { %v352_v36 = vsel %vm344_vm1, %v351_v35, 0.0 }
 0x19d   : > { %353 = vadd.xlane.f32.xlu0 %v352_v36 }
 0x226   : > { %v354_v45 = vpop.xlane.xlu0 %353 }
 0x227   : > { %v355_v46 = vmul.f32 0.015625, %v354_v45 }
 0x229   : > { %v356_v47 = vadd.f32 1e-05, %v355_v46 }
 0x22b   : > { %905 = vrsqrt.f32 %v356_v47 }
 0x238   : > { %v906_v51 = vpop.eup %905 }
 0x239   : > { %v358_v52 = vmul.f32 %v906_v51, %v350_v34 }
 0x23b   : > { %v363_v54 = vmul.f32 %v362_v50, %v358_v52 }
 0x23d   : > { %v368_v55 = vadd.f32 %v367_v53, %v363_v54 }
 0x23f   : > { %820 = vmatmul.mubr.msk.f32.vlgmr.msra.gmra.mxu0 %vm344_vm1, %v368_v55 }
 0x2ff   : > { %v450_v58 = vpop.f32.mrf.mxu0 }
 0x300   : > { %v451_v59 = vadd.f32 %v450_v58, %v380_v57 }
 0x301   : > { %v821_v60 = vpop.f32.mrf.mxu0 }
 0x302   : > { %v455_v61 = vsel %vm454_vm2, %v451_v59, -inf }
 0x303   : > { %456 = vmax.xlane.f32.xlu1 %v455_v61 }
 0x38c   : > { %v457_v62 = vpop.xlane.xlu1 %456 }
 0x38d   : > { %v458_v63 = vsub.f32 %v451_v59, %v457_v62 }
 0x38f   : > { %v459_v0 = vmul.f32 1.442695, %v458_v63 }
 0x391   : > { %907 = vpow2.f32 %v459_v0 }
 0x39e   : > { %v908_v2 = vpop.eup %907 }
 0x39f   : > { %v461_v3 = vsel %vm454_vm2, %v908_v2, 0.0 }
 0x3a0   : > { %462 = vadd.xlane.f32.xlu1 %v461_v3 }
 0x429   : > { %v463_v5 = vpop.xlane.xlu1 %462 }
 0x42a   : > { %909 = vrcp.f32 %v463_v5 }
 0x437   : > { %v910_v6 = vpop.eup %909 }
 0x438   : > { %v465_v7 = vmul.f32 %v910_v6, %v908_v2 }
 0x43a   : > { %825 = vmatmul.mubr.msk.f32.vlgmr.msra.gmra.mxu1 %vm454_vm2, %v465_v7 }
 0x43b   : > { %828 = vmatpush3.msra.mxu1 %v560_v8  ;;  %859 = vmatprep.mubr.msk.f32.mxu1 %vm974_vm0, %v973_v1 }
 0x43c   : > { %829 = vmatprep.subr.mxu1 %v973_v1 }
 0x43d   : > { %830 = vmatpush3.msra.mxu1 %v559_v9 }
 0x43e   : > { %831 = vmatprep.subr.mxu1 %v973_v1 }
 0x43f   : > { %832 = vmatpush3.msra.mxu1 %v558_v10 }
 0x440   : > { %833 = vmatprep.subr.mxu1 %v973_v1 }
 0x441   : > { %834 = vmatpush3.msra.mxu1 %v557_v11 }
 0x442   : > { %835 = vmatprep.subr.mxu1 %v973_v1 }
 0x443   : > { %836 = vmatpush3.msra.mxu1 %v556_v12 }
 0x444   : > { %837 = vmatprep.subr.mxu1 %v973_v1 }
 0x445   : > { %838 = vmatpush3.msra.mxu1 %v555_v13 }
 0x446   : > { %839 = vmatprep.subr.mxu1 %v973_v1 }
 0x447   : > { %840 = vmatpush3.msra.mxu1 %v554_v14 }
 0x448   : > { %841 = vmatprep.subr.mxu1 %v973_v1 }
 0x449   : > { %842 = vmatpush3.msra.mxu1 %v553_v15 }
 0x44a   : > { %843 = vmatprep.subr.mxu1 %v973_v1 }
 0x44b   : > { %844 = vmatpush3.msra.mxu1 %v552_v16 }
 0x44c   : > { %845 = vmatprep.subr.mxu1 %v973_v1 }
 0x44d   : > { %846 = vmatpush3.msra.mxu1 %v551_v18 }
 0x44e   : > { %847 = vmatprep.subr.mxu1 %v973_v1 }
 0x44f   : > { %848 = vmatpush3.msra.mxu1 %v550_v20 }
 0x450   : > { %849 = vmatprep.subr.mxu1 %v973_v1 }
 0x451   : > { %850 = vmatpush3.msra.mxu1 %v549_v22 }
 0x452   : > { %851 = vmatprep.subr.mxu1 %v973_v1 }
 0x453   : > { %852 = vmatpush3.msra.mxu1 %v548_v23 }
 0x454   : > { %853 = vmatprep.subr.mxu1 %v973_v1 }
 0x455   : > { %854 = vmatpush3.msra.mxu1 %v547_v24 }
 0x456   : > { %855 = vmatprep.subr.mxu1 %v973_v1 }
 0x457   : > { %856 = vmatpush3.msra.mxu1 %v546_v25 }
 0x458   : > { %857 = vmatprep.subr.mxu1 %v973_v1 }
 0x459   : > { %858 = vmatpush3.msra.mxu1 %v545_v26 }
 0x4fa   : > { %v540_v27 = vpop.f32.mrf.mxu1 }
 0x4fb   : > { %v544_v28 = vmul.f32 %v540_v27, %v1132_v17 }
 0x4fc   : > { %v826_v29 = vpop.f32.mrf.mxu1 }
 0x4fd   : > { %860 = vmatmul.mubr.f32.vlgmr.msra.gmra.mxu1 %v544_v28 }
 0x5bd   : > { %v631_v1 = vpop.f32.mrf.mxu1 }
 0x5be   : > { %v632_v32 = vadd.f32 %v631_v1, %v564_v31 }
 0x5bf   : > { %v861_v17 = vpop.f32.mrf.mxu1 }
 0x5c0   : > { %636 = vst.msk [vmem:[%s242_s11] sm:$0xff] %vm635_vm4, %v632_v32 }
 0x5c1   : > { %924 = shalt.err (!%p921_p3)
}
 0x5c2   : > { %s925_s20 = scalar_lea.hbm %s1268_s15, 128  ;;  %s929_s29 = scalar_lea.hbm %s1309_s6, 256 }
 0x5c3   : > { %p926_p4 = scmp.ne.s32.totalorder %s1268_s15, %s925_s20  ;;  %p930_p9 = scmp.lt.s32.totalorder %s1268_s15, %s1309_s6 }
 0x5c4   : > { %p931_p10 = scmp.lt.s32.totalorder %s929_s29, %s925_s20 }
 0x5c5   : > { %p927_p7 = pnand %p926_p4, %p1049_p5 }
 0x5c6   : > { %p932_p11 = por %p931_p10, %p930_p9 }
 0x5c7   : > { %p928_p8 = pneg %p927_p7 }
 0x5c9   : > { %p933_p12 = pnand %p932_p11, %p928_p8 }
 0x5cb   : > { %936 = shalt.err (!%p933_p12)
}
 0x5cc   : > { %862 = dma.vmem_to_hbm [thread:$0]  (%p1049_p5), %s652_s12, 128, %s1268_s15, %s638_s16  }
 0x5cd PF: > { %p868_p13 = scmp.ge.s32.totalorder %s971_s24, 2  ;;  %s663_s11 = sand.u32 1, %s959_s21  }
 0x5ce   : > { %s664_s13 = scalar_lea.sflag [#allocation3], %s663_s11 }
 0x5cf   : > { %p865_p0 = pnand %p868_p13, %p1053_p6 }
 0x5d1   : > { %p866_p1 = pneg %p865_p0 }
 0x5d3   : > { %954 = dma.done.wait (%p866_p1), %s664_s13, 128  }
 0x5d4   : > { %956 = vsyncadd (%p866_p1), %s664_s13, 4294967168  ;;  %p16_p2 = scmp.ge.s32.totalorder %s1036_s27, 4   ;;  %s1312_s21 = smov %s963_s22 }
 0x5d5   : > { %s1313_s22 = smov %s967_s23  ;;  %s1314_s23 = smov %s1047_s30 }
 0x5d6   : > { %s1315_s24 = smov %s1036_s27  ;;  %18 = sbr.rel (!%p16_p2) target bundleno = 3 (0x3), region = 79 }
 0x5db   :  { %669 = vsyncpa [#allocation3], 1 }
 0x5dc   :  { %671 = vsyncpa [#allocation3 + $0x1], 1 }

</bundles_post_ra>
